<compile_context>
chip_gen: v7x
topology: tpu7x:2x2x1
jax: 0.10.0
libtpu: 0.0.40
codegen_flags: <defaults>
</compile_context>

<pallas_src>
import math

import jax
import jax.numpy as jnp
from jax.experimental import pallas as pl
from jax.experimental.pallas import tpu as pltpu


# ---------------------------------------------------------------------------
# Parameter construction (plain-JAX glue mirroring the PyTorch __init__/_get_*)
# ---------------------------------------------------------------------------
def build_W_diag_dom(key, hidden_dim):
    """W_type == 'diag_dom'."""
    k1, k2, k3 = jax.random.split(key, 3)
    # nn.init.xavier_uniform_ on a [D, D-1] tensor: fan_in = D-1, fan_out = D.
    bound = math.sqrt(6.0 / ((hidden_dim - 1) + hidden_dim))
    W_base = jax.random.uniform(
        k1, (hidden_dim, hidden_dim - 1), minval=-bound, maxval=bound,
        dtype=jnp.float32)
    t_a = jax.random.uniform(k2, (hidden_dim,), minval=-1.0, maxval=1.0,
                             dtype=jnp.float32)
    r_a = jax.random.uniform(k3, (hidden_dim,), minval=-1.0, maxval=1.0,
                             dtype=jnp.float32)

    W_temp = jnp.concatenate(
        [W_base, jnp.zeros((hidden_dim, 1), dtype=jnp.float32)], axis=1)
    W = jnp.stack(
        [jnp.roll(W_temp[i], shift=i + 1, axis=-1) for i in range(hidden_dim)])
    W = (W + W.T) / 2.0
    W_sum = t_a * jnp.abs(W).sum(axis=1) + r_a
    W = W + jnp.diag(W_sum)
    return W


def build_omega_diag_vec(hidden_dim):
    """omega_type == 'diag' (omega_base initialized to ones).

    All supported omega types (identity / scalar / diag) are diagonal, so the
    kernel consumes the diagonal as a vector and applies it on the VPU.
    """
    return jnp.ones((hidden_dim,), dtype=jnp.float32)


# ---------------------------------------------------------------------------
# Pallas kernel bodies
# ---------------------------------------------------------------------------
def _graff_body(tau_ref, adj_ref, xk_ref, xi_ref, omega_ref, w_ref,
                out_ref, acc_ref, x0_ref=None, q_ref=None):
    k = pl.program_id(1)

    @pl.when(k == 0)
    def _():
        acc_ref[...] = jnp.zeros_like(acc_ref)

    # Inner reduction: pure adj_tile @ x_chunk accumulate (MXU + DMA bound).
    acc_ref[...] += jnp.dot(adj_ref[...], xk_ref[...],
                            preferred_element_type=jnp.float32)

    @pl.when(k == pl.num_programs(1) - 1)
    def _():
        tau = tau_ref[0, 0]
        x_i = xi_ref[...].astype(jnp.float32)
        # (norm_adj @ x) @ W on the MXU, once per output row tile.
        upd = jnp.dot(acc_ref[...], w_ref[...],
                      preferred_element_type=jnp.float32)
        # omega is diagonal -> per-lane multiply on the VPU (free slot).
        upd = upd + x_i * omega_ref[...]
        if x0_ref is not None:  # Q_type == 'free'; compiled out for 'zero'.
            upd = upd + jnp.dot(x0_ref[...].astype(jnp.float32), q_ref[...],
                                preferred_element_type=jnp.float32)
        out_ref[...] = (x_i + tau * upd).astype(out_ref.dtype)


def _graff_kernel_no_q(tau_ref, adj_ref, xk_ref, xi_ref, omega_ref, w_ref,
                       out_ref, acc_ref):
    _graff_body(tau_ref, adj_ref, xk_ref, xi_ref, omega_ref, w_ref,
                out_ref, acc_ref)


def _graff_kernel_with_q(tau_ref, adj_ref, xk_ref, xi_ref, omega_ref, w_ref,
                         x0_ref, q_ref, out_ref, acc_ref):
    _graff_body(tau_ref, adj_ref, xk_ref, xi_ref, omega_ref, w_ref,
                out_ref, acc_ref, x0_ref=x0_ref, q_ref=q_ref)


# ---------------------------------------------------------------------------
# Tiling helpers
# ---------------------------------------------------------------------------
def _round_up(n, m):
    return ((n + m - 1) // m) * m


def _largest_aligned_divisor(n, cap, align):
    """Largest t <= min(cap, n) with n % t == 0 and t % align == 0, else None."""
    cap = min(cap, n)
    t = (cap // align) * align
    while t >= align:
        if n % t == 0:
            return t
        t -= align
    return None


def _sublane_align(itemsize):
    # Sub-32-bit dtypes pack along sublanes: bf16 rows travel in pairs,
    # 1-byte rows in quads.
    return {4: 8, 2: 16, 1: 32}.get(int(itemsize), 8)


def _vmem_estimate(tm, tk, dp, adj_isz, xk_isz, out_isz, use_q):
    est = (2 * tm * tk * adj_isz                 # adj tile, double-buffered
           + 2 * tk * dp * xk_isz                # x k-slice, double-buffered
           + 2 * tm * dp * 4                     # x i-slice (residual)
           + (2 * tm * dp * 4 if use_q else 0)   # x_0 i-slice
           + 2 * tm * dp * out_isz               # output, double-buffered
           + tm * dp * 4                         # accumulator scratch
           + 2 * dp * dp * 4 * (2 if use_q else 1)  # W (+Q), resident
           + 2 * dp * 4)                         # omega row
    return est


# ---------------------------------------------------------------------------
# Wrapper: padding, tiling, BlockSpecs, compiler params.
# ---------------------------------------------------------------------------
def graff_conv_forward(x, x0, norm_adj, W, omega_diag, Q=None, tau=1.0,
                       adj_compute_dtype=jnp.bfloat16,
                       tm_cap=None, tk_cap=None):
    """GRAFFConv forward. Q=None means Q_type=='zero' (matmul compiled out).

    adj_compute_dtype controls the streaming dtype of the dominant N^2
    adjacency (and the x operand of adj@x); accumulation is always f32.
    Pass jnp.float32 for an exact-precision path.
    """
    N, D = x.shape
    assert norm_adj.shape == (N, N)
    assert W.shape == (D, D)
    assert omega_diag.shape == (D,)
    use_q = Q is not None
    if use_q:
        assert x0.shape == (N, D) and Q.shape == (D, D)

    out_dtype = x.dtype
    adj_dtype = jnp.dtype(adj_compute_dtype) if adj_compute_dtype is not None \
        else jnp.dtype(x.dtype)
    adj_isz = adj_dtype.itemsize
    xk_isz = adj_isz
    out_isz = jnp.dtype(out_dtype).itemsize
    align_m = _sublane_align(adj_isz)

    # ---- hardware-derived budgets (v7x: 64 MiB/TC; v5e/v6e: 128 MiB) -------
    try:
        vmem_cap = int(pltpu.get_tpu_info().vmem_capacity_bytes)
    except Exception:
        vmem_cap = 64 * 2 ** 20  # conservative fallback (v7x per-TC)
    if tm_cap is None:
        tm_cap = 1024 if vmem_cap >= 100 * 2 ** 20 else 512
    if tk_cap is None:
        tk_cap = 4096 if vmem_cap >= 100 * 2 ** 20 else 2048

    # ---- pad D (lane-dense blocks) and N (clean aligned tiling) ------------
    Dp = _round_up(D, 128)
    Np = _round_up(N, 128)

    TK = _largest_aligned_divisor(Np, tk_cap, 128)
    TM = _largest_aligned_divisor(Np, tm_cap, align_m)
    # Keep >=2 row blocks on the "parallel" axis (v7x has 2 TensorCores).
    if TM == Np and Np // 2 >= align_m:
        tm2 = _largest_aligned_divisor(Np, Np // 2, align_m)
        if tm2 is not None:
            TM = tm2

    # Shrink tiles until the double-buffered working set fits the VMEM budget.
    budget = int(0.70 * vmem_cap)
    while (_vmem_estimate(TM, TK, Dp, adj_isz, xk_isz, out_isz, use_q) > budget
           and TK > 128):
        nt = _largest_aligned_divisor(Np, TK // 2, 128)
        if nt is None or nt == TK:
            break
        TK = nt
    while (_vmem_estimate(TM, TK, Dp, adj_isz, xk_isz, out_isz, use_q) > budget
           and TM > align_m):
        nt = _largest_aligned_divisor(Np, TM // 2, align_m)
        if nt is None or nt == TM:
            break
        TM = nt

    grid = (Np // TM, Np // TK)

    # ---- pad inputs (zero rows/cols -> padded outputs are exactly zero) ----
    def pad2(a, rows, cols):
        return jnp.pad(a, ((0, rows - a.shape[0]), (0, cols - a.shape[1])))

    adj_p = pad2(norm_adj, Np, Np).astype(adj_dtype)
    xk_p = pad2(x, Np, Dp).astype(adj_dtype)      # streamed operand of adj@x
    xi_p = pad2(x, Np, Dp)                        # residual / omega operand
    w_p = pad2(W.astype(jnp.float32), Dp, Dp)
    omega_p = jnp.pad(omega_diag.astype(jnp.float32), (0, Dp - D)).reshape(1, Dp)
    tau_arr = jnp.full((1, 1), tau, dtype=jnp.float32)  # SMEM scalar, no retrace

    smem_spec = pl.BlockSpec(memory_space=pltpu.MemorySpace.SMEM)
    in_specs = [
        smem_spec,                                       # tau
        pl.BlockSpec((TM, TK), lambda i, k: (i, k)),     # norm_adj tile
        pl.BlockSpec((TK, Dp), lambda i, k: (k, 0)),     # x (k-slice, adj@x)
        pl.BlockSpec((TM, Dp), lambda i, k: (i, 0)),     # x (i-slice, residual)
        pl.BlockSpec((1, Dp), lambda i, k: (0, 0)),      # omega diag
        pl.BlockSpec((Dp, Dp), lambda i, k: (0, 0)),     # W
    ]
    inputs = [tau_arr, adj_p, xk_p, xi_p, omega_p, w_p]
    if use_q:
        x0_p = pad2(x0, Np, Dp)
        q_p = pad2(Q.astype(jnp.float32), Dp, Dp)
        in_specs += [
            pl.BlockSpec((TM, Dp), lambda i, k: (i, 0)),  # x_0 (i-slice)
            pl.BlockSpec((Dp, Dp), lambda i, k: (0, 0)),  # Q
        ]
        inputs += [x0_p, q_p]
        kernel = _graff_kernel_with_q
    else:
        kernel = _graff_kernel_no_q

    out_spec = pl.BlockSpec((TM, Dp), lambda i, k: (i, 0))

    est = _vmem_estimate(TM, TK, Dp, adj_isz, xk_isz, out_isz, use_q)
    vmem_floor = min(32 * 2 ** 20, int(0.75 * vmem_cap))
    vmem_limit = int(max(min(int(1.5 * est), int(0.75 * vmem_cap)), vmem_floor))

    # Advisory cost hint: long HBM-bound custom call (N^2 adjacency stream).
    flops = 2 * Np * Np * Dp + 2 * Np * Dp * Dp * (2 if use_q else 1)
    bytes_accessed = (Np * Np * adj_isz
                      + grid[0] * Np * Dp * xk_isz       # x k-slices re-read per row tile
                      + Np * Dp * 4 * (2 if use_q else 1)
                      + Np * Dp * out_isz)
    cost = pl.CostEstimate(flops=flops, transcendentals=0,
                           bytes_accessed=bytes_accessed)

    out_padded = pl.pallas_call(
        kernel,
        out_shape=jax.ShapeDtypeStruct((Np, Dp), out_dtype),
        grid=grid,
        in_specs=in_specs,
        out_specs=out_spec,
        scratch_shapes=[pltpu.VMEM((TM, Dp), jnp.float32)],
        compiler_params=pltpu.CompilerParams(
            dimension_semantics=("parallel", "arbitrary"),
            vmem_limit_bytes=vmem_limit),
        cost_estimate=cost,
    )(*inputs)

    return out_padded[:N, :D]


# ---------------------------------------------------------------------------
# Plain-JAX reference (for correctness check).
# ---------------------------------------------------------------------------
def graff_conv_reference(x, x0, norm_adj, W, omega_diag, Q, tau=1.0):
    omega = jnp.diag(omega_diag)
    return x + tau * (x @ omega + norm_adj @ x @ W + x0 @ Q)


if __name__ == "__main__":
    N = 64          # number of graph nodes
    HIDDEN = 32     # hidden_dim
    TAU = 1.0

    key = jax.random.PRNGKey(0)
    k_x, k_x0, k_adj, k_w, k_q = jax.random.split(key, 5)

    x = jax.random.normal(k_x, (N, HIDDEN), dtype=jnp.float32)
    x_0 = jax.random.normal(k_x0, (N, HIDDEN), dtype=jnp.float32)

    # Symmetrically-normalized random adjacency (dense), deterministic.
    a = (jax.random.uniform(k_adj, (N, N)) > 0.8).astype(jnp.float32)
    a = jnp.maximum(a, a.T) + jnp.eye(N, dtype=jnp.float32)  # symmetric, self-loops
    deg_inv_sqrt = 1.0 / jnp.sqrt(a.sum(axis=1))
    norm_adj = deg_inv_sqrt[:, None] * a * deg_inv_sqrt[None, :]

    # Parametrizations: W_type='diag_dom', omega_type='diag', Q_type='zero'.
    W = build_W_diag_dom(k_w, HIDDEN)
    omega_diag = build_omega_diag_vec(HIDDEN)
    Q_zero = jnp.zeros((HIDDEN, HIDDEN), dtype=jnp.float32)
    Q_free = 0.1 * jax.random.normal(k_q, (HIDDEN, HIDDEN), dtype=jnp.float32)

    ref = graff_conv_reference(x, x_0, norm_adj, W, omega_diag, Q_zero, tau=TAU)

    # 1) Default path: Q_type=='zero', bf16 adjacency streaming (f32 accum).
    out = graff_conv_forward(x, x_0, norm_adj, W, omega_diag, Q=None, tau=TAU)
    out = jax.block_until_ready(out)
    assert out.shape == (N, HIDDEN)
    assert jnp.allclose(out, ref, atol=3e-2, rtol=3e-2), "mismatch (bf16 default)"

    # 2) Exact f32 adjacency path, tight tolerance.
    out_f32 = graff_conv_forward(x, x_0, norm_adj, W, omega_diag, Q=None,
                                 tau=TAU, adj_compute_dtype=jnp.float32)
    out_f32 = jax.block_until_ready(out_f32)
    assert jnp.allclose(out_f32, ref, atol=1e-4, rtol=1e-4), "mismatch (f32)"

    # 3) Q_type == 'free': guarded x0@Q path (f32 adjacency, tight tolerance).
    out_q = graff_conv_forward(x, x_0, norm_adj, W, omega_diag, Q=Q_free,
                               tau=TAU, adj_compute_dtype=jnp.float32)
    out_q = jax.block_until_ready(out_q)
    ref_q = graff_conv_reference(x, x_0, norm_adj, W, omega_diag, Q_free, tau=TAU)
    assert jnp.allclose(out_q, ref_q, atol=1e-4, rtol=1e-4), "mismatch (Q=free)"

    print("KERNEL_OK")
</pallas_src>

<mosaic_0001>
module attributes {stable_mosaic.version = 11 : i64} {
  func.func @_graff_kernel_no_q(%arg0: i32, %arg1: i32, %arg2: memref<1x1xf32, #tpu.memory_space<smem>>, %arg3: memref<64x128xbf16, #tpu.memory_space<vmem>>, %arg4: memref<128x128xbf16, #tpu.memory_space<vmem>>, %arg5: memref<64x128xf32, #tpu.memory_space<vmem>>, %arg6: memref<1x128xf32, #tpu.memory_space<vmem>>, %arg7: memref<128x128xf32, #tpu.memory_space<vmem>>, %arg8: memref<64x128xf32, #tpu.memory_space<vmem>>, %arg9: memref<64x128xf32, #tpu.memory_space<vmem>>) attributes {dimension_semantics = [#tpu.dimension_semantics<parallel>, #tpu.dimension_semantics<arbitrary>], iteration_bounds = array<i64: 2, 1>, scalar_prefetch = 0 : i64, scratch_operands = 1 : i64, tpu.core_type = #tpu.core_type<tc>, window_params = [{transform_indices = @transform_0, window_bounds = array<i64: 1, 1>}, {transform_indices = @transform_1, window_bounds = array<i64: 64, 128>}, {transform_indices = @transform_2, window_bounds = array<i64: 128, 128>}, {transform_indices = @transform_3, window_bounds = array<i64: 64, 128>}, {pipeline_mode = #tpu.pipeline_mode<synchronous>, transform_indices = @transform_4, window_bounds = array<i64: 1, 128>}, {pipeline_mode = #tpu.pipeline_mode<synchronous>, transform_indices = @transform_5, window_bounds = array<i64: 128, 128>}, {transform_indices = @transform_6, window_bounds = array<i64: 64, 128>}]} {
    %c0_i32 = arith.constant 0 : i32
    %0 = arith.cmpi eq, %arg1, %c0_i32 : i32
    %1 = arith.extui %0 : i1 to i32
    %c0_i32_0 = arith.constant 0 : i32
    %2 = arith.cmpi ne, %1, %c0_i32_0 : i32
    scf.if %2 {
      %cst_10 = arith.constant 0.000000e+00 : f32
      %12 = vector.broadcast %cst_10 : f32 to vector<64x128xf32>
      %c0_11 = arith.constant 0 : index
      %c0_12 = arith.constant 0 : index
      %13 = vector.load %arg9[%c0_11, %c0_12] : memref<64x128xf32, #tpu.memory_space<vmem>>, vector<64x128xf32>
      tpu.vector_store %arg9[%c0_11, %c0_12], %12 {strides = array<i32>} : memref<64x128xf32, #tpu.memory_space<vmem>>, vector<64x128xf32>,
    } else {
    }
    %c0 = arith.constant 0 : index
    %c0_1 = arith.constant 0 : index
    %3 = vector.load %arg9[%c0, %c0_1] : memref<64x128xf32, #tpu.memory_space<vmem>>, vector<64x128xf32>
    %c0_2 = arith.constant 0 : index
    %c0_3 = arith.constant 0 : index
    %4 = vector.load %arg3[%c0_2, %c0_3] : memref<64x128xbf16, #tpu.memory_space<vmem>>, vector<64x128xbf16>
    %c0_4 = arith.constant 0 : index
    %c0_5 = arith.constant 0 : index
    %5 = vector.load %arg4[%c0_4, %c0_5] : memref<128x128xbf16, #tpu.memory_space<vmem>>, vector<128x128xbf16>
    %cst = arith.constant dense<0.000000e+00> : vector<64x128xf32>
    %6 = tpu.matmul %4, %5, %cst {dimension_numbers = #tpu.dot_dimension_numbers<[1], [0], [0], [1], [0, 0, 1, 1], [], []>} : vector<64x128xbf16>, vector<128x128xbf16>, vector<64x128xf32> -> vector<64x128xf32>
    %7 = arith.addf %3, %6 : vector<64x128xf32>
    %c0_6 = arith.constant 0 : index
    %c0_7 = arith.constant 0 : index
    %8 = vector.load %arg9[%c0_6, %c0_7] : memref<64x128xf32, #tpu.memory_space<vmem>>, vector<64x128xf32>
    tpu.vector_store %arg9[%c0_6, %c0_7], %7 {strides = array<i32>} : memref<64x128xf32, #tpu.memory_space<vmem>>, vector<64x128xf32>,
    %c0_i32_8 = arith.constant 0 : i32
    %9 = arith.cmpi eq, %arg1, %c0_i32_8 : i32
    %10 = arith.extui %9 : i1 to i32
    %c0_i32_9 = arith.constant 0 : i32
    %11 = arith.cmpi ne, %10, %c0_i32_9 : i32
    scf.if %11 {
      %c0_10 = arith.constant 0 : index
      %c0_11 = arith.constant 0 : index
      %12 = memref.load %arg2[%c0_10, %c0_11] : memref<1x1xf32, #tpu.memory_space<smem>>
      %c0_12 = arith.constant 0 : index
      %c0_13 = arith.constant 0 : index
      %13 = vector.load %arg5[%c0_12, %c0_13] : memref<64x128xf32, #tpu.memory_space<vmem>>, vector<64x128xf32>
      %c0_14 = arith.constant 0 : index
      %c0_15 = arith.constant 0 : index
      %14 = vector.load %arg9[%c0_14, %c0_15] : memref<64x128xf32, #tpu.memory_space<vmem>>, vector<64x128xf32>
      %c0_16 = arith.constant 0 : index
      %c0_17 = arith.constant 0 : index
      %15 = vector.load %arg7[%c0_16, %c0_17] : memref<128x128xf32, #tpu.memory_space<vmem>>, vector<128x128xf32>
      %cst_18 = arith.constant dense<0.000000e+00> : vector<64x128xf32>
      %16 = tpu.matmul %14, %15, %cst_18 {dimension_numbers = #tpu.dot_dimension_numbers<[1], [0], [0], [1], [0, 0, 1, 1], [], []>} : vector<64x128xf32>, vector<128x128xf32>, vector<64x128xf32> -> vector<64x128xf32>
      %c0_19 = arith.constant 0 : index
      %c0_20 = arith.constant 0 : index
      %17 = vector.load %arg6[%c0_19, %c0_20] : memref<1x128xf32, #tpu.memory_space<vmem>>, vector<1x128xf32>
      %18 = vector.broadcast %17 : vector<1x128xf32> to vector<64x128xf32>
      %19 = arith.mulf %13, %18 : vector<64x128xf32>
      %20 = arith.addf %16, %19 : vector<64x128xf32>
      %21 = vector.broadcast %12 : f32 to vector<64x128xf32>
      %22 = arith.mulf %21, %20 : vector<64x128xf32>
      %23 = arith.addf %13, %22 : vector<64x128xf32>
      %c0_21 = arith.constant 0 : index
      %c0_22 = arith.constant 0 : index
      %24 = vector.load %arg8[%c0_21, %c0_22] : memref<64x128xf32, #tpu.memory_space<vmem>>, vector<64x128xf32>
      tpu.vector_store %arg8[%c0_21, %c0_22], %23 {strides = array<i32>} : memref<64x128xf32, #tpu.memory_space<vmem>>, vector<64x128xf32>,
    } else {
    }
    return
  }
  func.func @transform_0(%arg0: i32, %arg1: i32) -> (i32, i32) {
    %c0_i32 = arith.constant 0 : i32
    %c0_i32_0 = arith.constant 0 : i32
    %c0_i32_1 = arith.constant 0 : i32
    return %c0_i32, %c0_i32_0 : i32, i32
  }
  func.func @transform_1(%arg0: i32, %arg1: i32) -> (i32, i32) {
    %c0_i32 = arith.constant 0 : i32
    return %arg0, %arg1 : i32, i32
  }
  func.func @transform_2(%arg0: i32, %arg1: i32) -> (i32, i32) {
    %c0_i32 = arith.constant 0 : i32
    %c0_i32_0 = arith.constant 0 : i32
    return %arg1, %c0_i32 : i32, i32
  }
  func.func @transform_3(%arg0: i32, %arg1: i32) -> (i32, i32) {
    %c0_i32 = arith.constant 0 : i32
    %c0_i32_0 = arith.constant 0 : i32
    return %arg0, %c0_i32 : i32, i32
  }
  func.func @transform_4(%arg0: i32, %arg1: i32) -> (i32, i32) {
    %c0_i32 = arith.constant 0 : i32
    %c0_i32_0 = arith.constant 0 : i32
    %c0_i32_1 = arith.constant 0 : i32
    return %c0_i32, %c0_i32_0 : i32, i32
  }
  func.func @transform_5(%arg0: i32, %arg1: i32) -> (i32, i32) {
    %c0_i32 = arith.constant 0 : i32
    %c0_i32_0 = arith.constant 0 : i32
    %c0_i32_1 = arith.constant 0 : i32
    return %c0_i32, %c0_i32_0 : i32, i32
  }
  func.func @transform_6(%arg0: i32, %arg1: i32) -> (i32, i32) {
    %c0_i32 = arith.constant 0 : i32
    %c0_i32_0 = arith.constant 0 : i32
    return %arg0, %c0_i32 : i32, i32
  }
}

</mosaic_0001>

<bundles_post_ra>
// kernel: tpu_custom_call.1
= control target key start
LH: loop header
LB: loop body
LE: loop exit
PB: predicated region body
PF: predicated region fallthrough
CT: control target
= control target key end

     0   :  { %s1755_s0 = inlined_call_operand.<no memory space> [shape: f32[1,1], index: 0, kind: input, shape index: {}]   ;;  %s1756_s1 = inlined_call_operand.hbm [shape: bf16[128,128], index: 1, kind: input, shape index: {}]   ;;  %s1757_s2 = inlined_call_operand.hbm [shape: bf16[128,128], index: 2, kind: input, shape index: {}]   ;;  %s1758_s3 = inlined_call_operand.hbm [shape: f32[128,128], index: 3, kind: input, shape index: {}]   ;;  %s1759_s4 = inlined_call_operand.vmem [shape: f32[1,128], index: 4, kind: input, shape index: {}]   ;;  %s1760_s5 = inlined_call_operand.hbm [shape: f32[128,128], index: 5, kind: input, shape index: {}]   ;;  %s1761_s6 = inlined_call_operand.hbm [shape: f32[128,128], index: 6, kind: output, shape index: {}]  }
   0x1   :  { %1777 = sst [smem:[#allocation22_spill]] %s1756_s1 }
   0x2   :  { %1778 = sst [smem:[#allocation23_spill]] %s1757_s2 }
   0x3   :  { %11 = sst [smem:[#allocation3]] %s1755_s0 }
   0x4   :  { %12 = vsyncpa [#allocation5], 0 }
   0x5   :  { %14 = vsyncpa [#allocation5 + $0x1], 0 }
   0x6   :  { %15 = vsyncpa [#allocation8], 0 }
   0x7   :  { %16 = vsyncpa [#allocation6], 0 }
   0x8   :  { %18 = vsyncpa [#allocation6 + $0x1], 0  ;;  %s1423_s23 = smov 0   ;;  %s1425_s24 = smov 0  }
   0x9   :  { %s1427_s25 = smov 0   ;;  %s1429_s26 = smov 0  }
   0xa   :  { %s1431_s27 = smov 0   ;;  %s1433_s28 = smov 0  }
   0xb LB: > { %1779 = sst [smem:[#allocation17_spill]] %s1360_s25  ;;  %s1454_s0 = sadd.s32 4294967295, %s1372_s28   ;;  %s1372_s28 = sphi %s1433_s28, %s24_s28   ;;  %s1368_s27 = sphi %s1431_s27, %s1818_s27   ;;  %s1364_s26 = sphi %s1429_s26, %s1817_s26   ;;  %s1360_s25 = sphi %s1427_s25, %s1813_s25   ;;  %s1356_s24 = sphi %s1425_s24, %s1816_s24   ;;  %s1352_s23 = sphi %s1423_s23, %s1815_s23  }
   0xc   : > { %1780 = sst [smem:[#allocation18_spill]] %s1372_s28  ;;  %s882_s29 = sadd.s32 4294967294, %s1372_s28  }
   0xd   : > { %p79_p0 = scmp.ne.s32.totalorder %s1356_s24, %s1352_s23  ;;  %p1762_p1 = scmp.eq.s32.totalorder %s1454_s0, 0 }
   0xe   : > { %p203_p3 = scmp.eq.s32.totalorder %s882_s29, 1  ;;  %p883_p5 = scmp.ge.s32.totalorder %s1372_s28, 1 }
   0xf   : > { %p1463_p4 = por %p1762_p1, %p79_p0  ;;  %p210_p7 = scmp.lt.s32.totalorder %s1372_s28, 3 }
  0x10   : > { %p1468_p6 = por %p203_p3, %p79_p0  ;;  %s1374_s9 = smov [#allocation7]  }
  0x11   : > { %s1781_s30 = scalar_select %p1463_p4, 1, 0 }
  0x12   : > { %s1782_s7 = scalar_select %p1468_p6, 1, 0 }
  0x13   : > { %p1473_p8 = pnand %p883_p5, %p210_p7  ;;  %s228_s10 = sshll.u32 %s1374_s9, 4  ;;  %s229_s10 = int_to_ptr.vmem [resolvable:$true] %s228_s10 }
  0x14   : > { %1783 = sst [smem:[#allocation19_spill]] %s1782_s7  ;;  %s36_s12 = sadd.s32 1, %s1368_s27 }
  0x15   : > { %s1784_s8 = scalar_select %p1473_p8, 1, 0 }
  0x16   : > { %p1070_p9 = pneg %p1473_p8  ;;  %s1786_s2 = sld [smem:[#allocation23_spill]] }
  0x18   : > { %p1482_p11 = pnand %p1070_p9, %p1762_p1 }
  0x1a   : > { %p1768_p13 = pneg %p1482_p11 }
  0x1c   : > { %s1162_s15 = scalar_lea.hbm %s1786_s2, 1024 }
  0x1d   : > { %p1163_p12 = scmp.ne.s32.totalorder %s1786_s2, %s1162_s15  ;;  %p1169_p5 = scmp.lt.u32.totalorder %s1162_s15, %s1786_s2 }
  0x1f   : > { %p1165_p0 = pnand %p1768_p13, %p1163_p12 }
  0x21   : > { %p1166_p3 = pneg %p1165_p0 }
  0x23   : > { %p1171_p7 = pnand %p1169_p5, %p1166_p3 }
  0x25   : > { %1174 = shalt.err (!%p1171_p7)
}
  0x26   : > { %s1175_s20 = scalar_lea.vmem %s229_s10, 1024  ;;  %p1183_p2 = scmp.lt.s32.totalorder %s229_s10, %s229_s10 }
  0x27   : > { %p1176_p9 = scmp.ne.s32.totalorder %s229_s10, %s1175_s20  ;;  %p1184_p6 = scmp.lt.s32.totalorder %s1175_s20, %s1175_s20 }
  0x29   : > { %p1178_p10 = pnand %p1176_p9, %p1768_p13  ;;  %p1185_p4 = por %p1184_p6, %p1183_p2 }
  0x2b   : > { %p1179_p1 = pneg %p1178_p10 }
  0x2d   : > { %p1186_p8 = pnand %p1185_p4, %p1179_p1 }
  0x2f   : > { %1189 = shalt.err (!%p1186_p8)
}
  0x30   : > { %s1765_s21 = smov 64   ;;  %s1766_s22 = smov 4  }
  0x31   : > { %1073 = dma.hbm_to_vmem [thread:$0]  (!%p1482_p11), %s1786_s2, 1024, %s229_s10, [#allocation8], %s1765_s21, %s1765_s21, %s1766_s22  }
  0x32   : > { %p38_p1 = scmp.ge.s32.totalorder %s36_s12, 2  ;;  %s66_s13 = sadd.s32 1, %s1360_s25 }
  0x33   : > { %p73_p2 = scmp.ne.s32.totalorder %s1360_s25, %s1356_s24  ;;  %p74_p4 = scmp.eq.s32.totalorder %s1372_s28, 0 }
  0x34   : > { %s1820_s12 = smov (%p38_p1, %s36_s12), 0  ;;  %p1789_p8 = scmp.eq.s32.totalorder %s1454_s0, 1 }
  0x35   : > { %1787 = sst [smem:[#allocation20_spill]] %s1820_s12  ;;  %p1518_p6 = por %p74_p4, %p73_p2 }
  0x36   : > { %p1524_p10 = por %p1789_p8, %p73_p2  ;;  %s61_s16 = ssub.s32 %s1368_s27, %s1820_s12 }
  0x37   : > { %p1090_p12 = scmp.lt.s32.totalorder %s1372_s28, 2  ;;  %p64_p0 = scmp.eq.s32.totalorder %s61_s16, 0 }
  0x38   : > { %s1790_s15 = scalar_select %p1524_p10, 1, 0 }
  0x39   : > { %s258_s10 = sand.u32 1, %s1372_s28   ;;  %s260_s17 = sand.u32 1, %s1360_s25  }
  0x3a   : > { %s1534_s18 = scalar_select %p64_p0, %s1360_s25, %s66_s13  }
  0x3b   : > { %s887_s19 = sshll.u32 %s260_s17, 5  ;;  %s917_s20 = sshll.u32 %s1368_s27, 9 }
  0x3c   : > { %1791 = sst [smem:[#allocation21_spill]] %s1534_s18  ;;  %s1792_s1 = sld [smem:[#allocation22_spill]] }
  0x3d   : > { %s262_s22 = scalar_lea.vmem [#allocation4], %s887_s19  ;;  %p1544_p3 = pnand %p1090_p12, %p1518_p6 }
  0x3e   : > { %s270_s2 = sshll.u32 %s262_s22, 4  ;;  %s1550_s13 = sshll.u32 %s260_s17, 6  ;;  %s1548_s2 = int_to_ptr.vmem [resolvable:$true] %s270_s2 }
  0x3f   : > { %s1793_s16 = scalar_select %p1544_p3, 1, 0 }
  0x40   : > { %s1552_s29 = scalar_lea.sflag [#allocation5], %s258_s10  ;;  %p1774_p7 = pneg %p1544_p3 }
  0x42   : > { %s1540_s21 = scalar_lea.hbm %s1792_s1, %s917_s20  ;;  %s1195_s19 = scalar_lea.hbm %s1792_s1, 1024 }
  0x43   : > { %s1190_s20 = scalar_lea.hbm %s1540_s21, 512  ;;  %p1196_p2 = scmp.lt.u32.totalorder %s1540_s21, %s1792_s1 }
  0x44   : > { %p1191_p5 = scmp.ne.s32.totalorder %s1540_s21, %s1190_s20  ;;  %p1197_p4 = scmp.lt.u32.totalorder %s1195_s19, %s1190_s20 }
  0x45   : > { %p1199_p8 = scmp.lt.u32.totalorder %s1190_s20, %s1540_s21 }
  0x46   : > { %p1193_p9 = pnand %p1774_p7, %p1191_p5  ;;  %p1198_p6 = por %p1197_p4, %p1196_p2 }
  0x48   : > { %p1194_p1 = pneg %p1193_p9  ;;  %p1200_p12 = por %p1199_p8, %p1198_p6 }
  0x4a   : > { %p1201_p0 = pnand %p1200_p12, %p1194_p1 }
  0x4c   : > { %1204 = shalt.err (!%p1201_p0)
}
  0x4d   : > { %s1205_s10 = scalar_lea.vmem %s1548_s2, 512  ;;  %s1377_s17 = smov [#allocation4]  }
  0x4e   : > { %p1206_p5 = scmp.ne.s32.totalorder %s1548_s2, %s1205_s10  ;;  %s1210_s22 = sshll.u32 %s1377_s17, 4  ;;  %s1211_s22 = int_to_ptr.vmem [resolvable:$false] %s1210_s22 }
  0x4f   : > { %s1212_s12 = scalar_lea.vmem %s1211_s22, 1024  ;;  %p1213_p10 = scmp.lt.s32.totalorder %s1548_s2, %s1211_s22 }
  0x50   : > { %p1208_p9 = pnand %p1206_p5, %p1774_p7  ;;  %p1214_p2 = scmp.lt.s32.totalorder %s1212_s12, %s1205_s10 }
  0x52   : > { %p1209_p13 = pneg %p1208_p9  ;;  %p1215_p4 = por %p1214_p2, %p1213_p10 }
  0x54   : > { %p1216_p6 = pnand %p1215_p4, %p1209_p13 }
  0x56   : > { %1219 = shalt.err (!%p1216_p6)
}
  0x57   : > { %s1794_s20 = smov 4   ;;  %s1795_s14 = smov 64  }
  0x58   : > { %1080 = dma.hbm_to_vmem [thread:$0]  (!%p1544_p3), %s1540_s21, 512, %s1548_s2, %s1552_s29, %s1795_s14, %s1795_s14, %s1794_s20  }
  0x59   : > { %s284_s19 = scalar_lea.vmem [#allocation9], %s1550_s13  ;;  %s1378_s17 = smov [#allocation10]  }
  0x5a   : > { %s291_s9 = sshll.u32 %s284_s19, 4  ;;  %s244_s1 = sshll.u32 %s1378_s17, 4  ;;  %s245_s1 = int_to_ptr.vmem [resolvable:$true] %s244_s1  ;;  %s1608_s9 = int_to_ptr.vmem [resolvable:$true] %s291_s9 }
  0x5b   : > { %s1220_s12 = scalar_lea.hbm %s1760_s5, 2048  ;;  %p1796_p10 = pneg %p1482_p11 }
  0x5c   : > { %p1221_p13 = scmp.ne.s32.totalorder %s1760_s5, %s1220_s12  ;;  %p1227_p12 = scmp.lt.u32.totalorder %s1220_s12, %s1760_s5 }
  0x5e   : > { %p1223_p1 = pnand %p1221_p13, %p1796_p10 }
  0x60   : > { %p1224_p8 = pneg %p1223_p1 }
  0x62   : > { %p1229_p0 = pnand %p1227_p12, %p1224_p8 }
  0x64   : > { %1232 = shalt.err (!%p1229_p0)
}
  0x65   : > { %s1233_s2 = scalar_lea.vmem %s245_s1, 2048  ;;  %p1797_p9 = pmov %p1796_p10 }
  0x66   : > { %p1234_p5 = scmp.ne.s32.totalorder %s245_s1, %s1233_s2  ;;  %p1241_p6 = scmp.lt.s32.totalorder %s245_s1, %s245_s1 }
  0x67   : > { %p1242_p7 = scmp.lt.s32.totalorder %s1233_s2, %s1233_s2 }
  0x68   : > { %p1236_p2 = pnand %p1234_p5, %p1797_p9 }
  0x69   : > { %p1243_p3 = por %p1242_p7, %p1241_p6 }
  0x6a   : > { %p1237_p4 = pneg %p1236_p2 }
  0x6c   : > { %p1244_p10 = pnand %p1243_p3, %p1237_p4 }
  0x6e   : > { %1247 = shalt.err (!%p1244_p10)
}
  0x6f   : > { %s1379_s25 = smov 128   ;;  %s1380_s28 = smov 8  }
  0x70   : > { %1076 = dma.hbm_to_vmem [thread:$0]  (!%p1482_p11), %s1760_s5, 2048, %s245_s1, [#allocation8], %s1379_s25, %s1379_s25, %s1380_s28  }
  0x71   : > { %s918_s18 = sshll.u32 %s1368_s27, 10  ;;  %p1798_p7 = scmp.ne.s32.totalorder %s1793_s16, 0 }
  0x72   : > { %s1613_s14 = scalar_lea.hbm %s1758_s3, %s918_s18  ;;  %s1253_s17 = scalar_lea.hbm %s1758_s3, 2048 }
  0x73   : > { %s1248_s11 = scalar_lea.hbm %s1613_s14, 1024  ;;  %p1799_p13 = pneg %p1798_p7 }
  0x74   : > { %p1249_p3 = scmp.ne.s32.totalorder %s1613_s14, %s1248_s11  ;;  %p1254_p11 = scmp.lt.u32.totalorder %s1613_s14, %s1758_s3 }
  0x75   : > { %p1255_p12 = scmp.lt.u32.totalorder %s1253_s17, %s1248_s11  ;;  %p1257_p5 = scmp.lt.u32.totalorder %s1248_s11, %s1613_s14 }
  0x76   : > { %p1251_p1 = pnand %p1249_p3, %p1799_p13 }
  0x77   : > { %p1256_p0 = por %p1255_p12, %p1254_p11 }
  0x78   : > { %p1252_p8 = pneg %p1251_p1 }
  0x79   : > { %p1258_p9 = por %p1257_p5, %p1256_p0 }
  0x7b   : > { %p1259_p2 = pnand %p1258_p9, %p1252_p8 }
  0x7d   : > { %1262 = shalt.err (!%p1259_p2)
}
  0x7e   : > { %s1263_s12 = scalar_lea.vmem %s1608_s9, 1024  ;;  %p1800_p6 = pmov %p1799_p13 }
  0x7f   : > { %p1264_p4 = scmp.ne.s32.totalorder %s1608_s9, %s1263_s12  ;;  %s1381_s2 = smov [#allocation9]  }
  0x80   : > { %s1268_s7 = sshll.u32 %s1381_s2, 4  ;;  %s1269_s7 = int_to_ptr.vmem [resolvable:$false] %s1268_s7 }
  0x81   : > { %p1266_p10 = pnand %p1264_p4, %p1800_p6  ;;  %s1270_s21 = scalar_lea.vmem %s1269_s7, 2048 }
  0x82   : > { %p1271_p13 = scmp.lt.s32.totalorder %s1608_s9, %s1269_s7  ;;  %p1272_p1 = scmp.lt.s32.totalorder %s1270_s21, %s1263_s12 }
  0x83   : > { %p1267_p3 = pneg %p1266_p10 }
  0x84   : > { %p1273_p11 = por %p1272_p1, %p1271_p13 }
  0x86   : > { %p1274_p12 = pnand %p1273_p11, %p1267_p3 }
  0x88   : > { %1277 = shalt.err (!%p1274_p12)
}
  0x89   : > { %1083 = dma.hbm_to_vmem [thread:$0]  (!%p1798_p7), %s1613_s14, 1024, %s1608_s9, %s1552_s29, %s1379_s25, %s1379_s25, %s1380_s28  }
  0x8a   : > { %p1801_p8 = scmp.ne.s32.totalorder %s1784_s8, 0 }
  0x8b   : > { %s305_s18 = sand.u32 (!%p1801_p8), 1, %s1454_s0   ;;  %s1646_s13 = sand.u32 (!%p1801_p8), 1, %s1356_s24  }
  0x8c   : > { %303 = sbr.rel (%p1801_p8) target bundleno = 651 (0x28b), region = 44  ;;  %s894_s20 = sshll.u32 (!%p1801_p8), %s1646_s13, 5 }
  0x8d   : > { %s306_s11 = scalar_lea.sflag (!%p1801_p8), [#allocation5], %s305_s18  ;;  %s1649_s16 = scalar_lea.vmem (!%p1801_p8), [#allocation4], %s894_s20 }
  0x8e   : > { %p1802_p0 = scmp.ne.s32.totalorder (!%p1801_p8), %s1781_s30, 0 }
  0x93   : > { %1331 = dma.done.wait (%p1802_p0), %s306_s11, 512  }
  0x94   : > { %1333 = vsyncadd (%p1802_p0), %s306_s11, 4294966784  ;;  %p1803_p7 = scmp.eq.s32.totalorder %s1454_s0, 0 }
  0x96   : > { %1335 = dma.done.wait (%p1803_p7), [#allocation8], 1024   ;;  %p1804_p5 = pmov %p1803_p7 }
  0x97   : > { %s896_s8 = sshll.u32 %s1646_s13, 6 }
  0x98   : > { %1337 = vsyncadd (%p1804_p5), [#allocation8], 4294966272  ;;  %s1662_s29 = scalar_lea.vmem [#allocation9], %s896_s8 }
  0x99   : > { %1339 = dma.done.wait (%p1802_p0), %s306_s11, 1024  }
  0x9a   : > { %1341 = vsyncadd (%p1802_p0), %s306_s11, 4294966272  ;;  %p1805_p9 = pmov %p1804_p5 }
  0x9b   : > { %p1806_p2 = pmov %p1804_p5 }
  0x9c   : > { %1343 = dma.done.wait (%p1805_p9), [#allocation8], 2048  }
  0x9d   : > { %1345 = vsyncadd (%p1806_p2), [#allocation8], 4294965248  ;;  %v1150_v0 = vld [vmem:[#allocation7] sm:$0xff]   ;;  %v1151_v1 = vld [vmem:[#allocation7 + $0x8] sm:$0xff]   ;;  %s565_s0 = sld [smem:[#allocation3]]  ;;  %s1688_s25 = scalar_lea.vmem [#allocation11], %s896_s8 }
  0x9e   : > { %956 = vmatprep.subr.bf16.mxu0 %v1150_v0  ;;  %v1152_v2 = vld [vmem:[#allocation7 + $0x10] sm:$0xff]   ;;  %v1153_v3 = vld [vmem:[#allocation7 + $0x18] sm:$0xff]   ;;  %v1158_v4 = vld [vmem:[%s1649_s16] sm:$0xff]   ;;  %s919_s28 = sshll.u32 %s1364_s26, 10  ;;  %s757_s14 = sshll.u32 %s1688_s25, 4  ;;  %s1704_s14 = int_to_ptr.vmem [resolvable:$true] %s757_s14 }
  0x9f   : > { %957 = vmatpush3.bf16.msra.mxu0 %v1150_v0  ;;  %972 = vmatprep.mubr.bf16.mxu0 %v1158_v4  ;;  %v1154_v5 = vld [vmem:[#allocation7 + $0x20] sm:$0xff]   ;;  %v583_v7 = vld [vmem:[#allocation10 + $0x8] sm:$0xff]  ;;  %v584_v8 = vld [vmem:[#allocation10 + $0x10] sm:$0xff]  ;;  %s1702_s17 = scalar_lea.hbm %s1761_s6, %s919_s28  ;;  %s744_s26 = scalar_lea.sflag [#allocation6], %s1646_s13 }
  0xa0   : > { %958 = vmatprep.subr.bf16.mxu0 %v1151_v1  ;;  %v582_v6 = vld [vmem:[#allocation10] sm:$0xff]  ;;  %v585_v10 = vld [vmem:[#allocation10 + $0x18] sm:$0xff]  ;;  %v587_v13 = vld [vmem:[#allocation10 + $0x28] sm:$0xff]  ;;  %s1278_s10 = scalar_lea.vmem %s1704_s14, 1024  ;;  %p1807_p6 = scmp.ne.s32.totalorder %s1790_s15, 0 }
  0xa1   : > { %v1024_v9 = vpack.c.bf16 %v583_v7, %v582_v6  ;;  %v1028_v11 = vpack.c.bf16 %v585_v10, %v584_v8  ;;  %v586_v12 = vld [vmem:[#allocation10 + $0x20] sm:$0xff]  ;;  %v1155_v14 = vld [vmem:[#allocation7 + $0x28] sm:$0xff]   ;;  %v588_v16 = vld [vmem:[#allocation10 + $0x30] sm:$0xff]  ;;  %p1279_p4 = scmp.ne.s32.totalorder %s1704_s14, %s1278_s10  ;;  %s1382_s22 = smov [#allocation11]  }
  0xa2   : > { %v1032_v15 = vpack.c.bf16 %v587_v13, %v586_v12  ;;  %v589_v17 = vld [vmem:[#allocation10 + $0x38] sm:$0xff]  ;;  %v1156_v18 = vld [vmem:[#allocation7 + $0x30] sm:$0xff]   ;;  %v590_v20 = vld [vmem:[#allocation10 + $0x40] sm:$0xff]  ;;  %s1282_s12 = sshll.u32 %s1382_s22, 4  ;;  %s1283_s12 = int_to_ptr.vmem [resolvable:$false] %s1282_s12 }
  0xa3   : > { %959 = vmatpush3.bf16.msra.mxu0 %v1151_v1  ;;  %1025 = vmatprep.subr.bf16.mxu1 %v1024_v9  ;;  %v1036_v19 = vpack.c.bf16 %v589_v17, %v588_v16  ;;  %v591_v21 = vld [vmem:[#allocation10 + $0x48] sm:$0xff]  ;;  %v1157_v22 = vld [vmem:[#allocation7 + $0x38] sm:$0xff]   ;;  %v592_v24 = vld [vmem:[#allocation10 + $0x50] sm:$0xff]  ;;  %v718_v52 = vstv %s565_s0  ;;  %p1280_p10 = pnand %p1279_p4, %p1807_p6  ;;  %s1284_s2 = scalar_lea.vmem %s1283_s12, 2048 }
  0xa4   : > { %960 = vmatprep.subr.bf16.mxu0 %v1152_v2  ;;  %1027 = vmatpush3.bf16.msra.mxu1 %v1024_v9  ;;  %v1040_v23 = vpack.c.bf16 %v591_v21, %v590_v20  ;;  %v593_v25 = vld [vmem:[#allocation10 + $0x58] sm:$0xff]  ;;  %v1159_v27 = vld [vmem:[%s1649_s16 + $0x8] sm:$0xff]   ;;  %v594_v28 = vld [vmem:[#allocation10 + $0x60] sm:$0xff]  ;;  %p1285_p13 = scmp.lt.s32.totalorder %s1704_s14, %s1283_s12  ;;  %p1286_p1 = scmp.lt.s32.totalorder %s1284_s2, %s1278_s10 }
  0xa5   : > { %1029 = vmatprep.subr.bf16.mxu1 %v1028_v11  ;;  %v1044_v26 = vpack.c.bf16 %v593_v25, %v592_v24  ;;  %v595_v29 = vld [vmem:[#allocation10 + $0x68] sm:$0xff]  ;;  %v1160_v30 = vld [vmem:[%s1649_s16 + $0x10] sm:$0xff]   ;;  %v1161_v32 = vld [vmem:[%s1649_s16 + $0x18] sm:$0xff]   ;;  %p1281_p3 = pneg %p1280_p10 }
  0xa6   : > { %v1048_v31 = vpack.c.bf16 %v595_v29, %v594_v28  ;;  %v596_v33 = vld [vmem:[#allocation10 + $0x70] sm:$0xff]  ;;  %v597_v34 = vld [vmem:[#allocation10 + $0x78] sm:$0xff]  ;;  %v567_v44 = vld [vmem:[%s1662_s29 + $0x8] sm:$0xff]  ;;  %p1287_p11 = por %p1286_p1, %p1285_p13 }
  0xa7   : > { %961 = vmatpush3.bf16.msra.mxu0 %v1152_v2  ;;  %v1052_v35 = vpack.c.bf16 %v597_v34, %v596_v33  ;;  %v911_v45 = vld [vmem:[%s1759_s4] ss:$0 sm:$0xff]  ;;  %v569_v49 = vld [vmem:[%s1662_s29 + $0x18] sm:$0xff]  ;;  %v568_v50 = vld [vmem:[%s1662_s29 + $0x10] sm:$0xff] }
  0xa8   : > { %962 = vmatprep.subr.bf16.mxu0 %v1153_v3  ;;  %1031 = vmatpush3.bf16.msra.mxu1 %v1028_v11  ;;  %v566_v46 = vld [vmem:[%s1662_s29] sm:$0xff]  ;;  %v606_v47 = vmul.f32 %v911_v45, %v567_v44  ;;  %v608_v55 = vmul.f32 %v911_v45, %v569_v49  ;;  %v607_v57 = vmul.f32 %v911_v45, %v568_v50  ;;  %v571_v58 = vld [vmem:[%s1662_s29 + $0x28] sm:$0xff]  ;;  %v573_v6 = vld [vmem:[%s1662_s29 + $0x38] sm:$0xff]  ;;  %p1288_p12 = pnand %p1287_p11, %p1281_p3 }
  0xa9   : > { %1033 = vmatprep.subr.bf16.mxu1 %v1032_v15  ;;  %v605_v48 = vmul.f32 %v911_v45, %v566_v46  ;;  %v570_v60 = vld [vmem:[%s1662_s29 + $0x20] sm:$0xff]  ;;  %v610_v2 = vmul.f32 %v911_v45, %v571_v58  ;;  %v572_v8 = vld [vmem:[%s1662_s29 + $0x30] sm:$0xff] }
  0xaa   : > { %v611_v17 = vmul.f32 %v911_v45, %v572_v8 }
  0xab   : > { %963 = vmatpush3.bf16.msra.mxu0 %v1153_v3 }
  0xac   : > { %964 = vmatprep.subr.bf16.mxu0 %v1154_v5  ;;  %1035 = vmatpush3.bf16.msra.mxu1 %v1032_v15 }
  0xad   : > { %1037 = vmatprep.subr.bf16.mxu1 %v1036_v19 }
  0xaf   : > { %965 = vmatpush3.bf16.msra.mxu0 %v1154_v5  ;;  %v609_v5 = vmul.f32 %v911_v45, %v570_v60 }
  0xb0   : > { %966 = vmatprep.subr.bf16.mxu0 %v1155_v14  ;;  %1039 = vmatpush3.bf16.msra.mxu1 %v1036_v19 }
  0xb1   : > { %1041 = vmatprep.subr.bf16.mxu1 %v1040_v23 }
  0xb3   : > { %967 = vmatpush3.bf16.msra.mxu0 %v1155_v14  ;;  %v612_v14 = vmul.f32 %v911_v45, %v573_v6 }
  0xb4   : > { %968 = vmatprep.subr.bf16.mxu0 %v1156_v18  ;;  %1043 = vmatpush3.bf16.msra.mxu1 %v1040_v23 }
  0xb5   : > { %1045 = vmatprep.subr.bf16.mxu1 %v1044_v26 }
  0xb7   : > { %969 = vmatpush3.bf16.msra.mxu0 %v1156_v18 }
  0xb8   : > { %970 = vmatprep.subr.bf16.mxu0 %v1157_v22  ;;  %1047 = vmatpush3.bf16.msra.mxu1 %v1044_v26 }
  0xb9   : > { %1049 = vmatprep.subr.bf16.mxu1 %v1048_v31 }
  0xbb   : > { %971 = vmatpush3.bf16.msra.mxu0 %v1157_v22 }
  0xbc   : > { %1051 = vmatpush3.bf16.msra.mxu1 %v1048_v31 }
  0xbd   : > { %1053 = vmatprep.subr.bf16.mxu1 %v1052_v35 }
  0xbe   : > { %973 = vmatmul.mubr.bf16.vlgmr.msra.gmra.mrb[0].mxu0 %v1159_v27 }
  0xbf   : > { %976 = vmatprep.mubr.bf16.mxu0 %v1160_v30 }
  0xc0   : > { %1055 = vmatpush3.bf16.msra.mxu1 %v1052_v35 }
  0xc6   : > { %977 = vmatmul.mubr.bf16.gmra.mrb[4].mxu0 %v1161_v32 }
 0x191   : > { %v974_v36 = vpop.f32.mrb[0].mxu0 }
 0x192   : > { %v515_v37 = vpop.f32.mrb[1].mxu0 }
 0x193   : > { %v975_v38 = vpop.f32.mrb[2].mxu0  ;;  %1012 = vmatprep.mubr.f32.mxu1 %v515_v37 }
 0x194   : > { %v518_v39 = vpop.f32.mrb[3].mxu0 }
 0x195   : > { %1013 = vmatmul.mubr.f32.vlgmr.msra.gmra.mrb[0].mxu1 %v518_v39 }
 0x196   : > { %1015 = vmatprep.mubr.f32.mxu1 %v974_v36 }
 0x199   : > { %v978_v40 = vpop.f32.mrb[4].mxu0  ;;  %1016 = vmatmul.mubr.f32.gmra.mrb[2].mxu1 %v975_v38 }
 0x19a   : > { %v531_v41 = vpop.f32.mrb[5].mxu0 }
 0x19b   : > { %v979_v42 = vpop.f32.mrb[6].mxu0  ;;  %1018 = vmatprep.mubr.f32.mxu1 %v531_v41 }
 0x19c   : > { %v534_v43 = vpop.f32.mrb[7].mxu0 }
 0x19d   : > { %1019 = vmatmul.mubr.f32.gmra.mrb[4].mxu1 %v534_v43 }
 0x19e   : > { %1021 = vmatprep.mubr.f32.mxu1 %v978_v40 }
 0x1a1   : > { %1022 = vmatmul.mubr.f32.gmra.mrb[6].mxu1 %v979_v42 }
 0x268   : > { %v1014_v51 = vpop.f32.mrb[0].mxu1 }
 0x269   : > { %v685_v53 = vadd.f32 %v1014_v51, %v606_v47  ;;  %v679_v54 = vpop.f32.mrb[1].mxu1 }
 0x26a   : > { %v680_v56 = vadd.f32 %v679_v54, %v605_v48 }
 0x26b   : > { %v720_v59 = vmul.f32 %v718_v52, %v685_v53 }
 0x26c   : > { %v719_v61 = vmul.f32 %v718_v52, %v680_v56  ;;  %v1017_v62 = vpop.f32.mrb[2].mxu1 }
 0x26d   : > { %v728_v63 = vadd.f32 %v720_v59, %v567_v44  ;;  %v695_v0 = vadd.f32 %v1017_v62, %v608_v55  ;;  %v689_v1 = vpop.f32.mrb[3].mxu1 }
 0x26e   : > { %v727_v3 = vadd.f32 %v719_v61, %v566_v46  ;;  %v690_v4 = vadd.f32 %v689_v1, %v607_v57 }
 0x26f   : > { %736 = vst [vmem:[%s1688_s25 + $0x8] sm:$0xff] %v728_v63  ;;  %v722_v7 = vmul.f32 %v718_v52, %v695_v0 }
 0x270   : > { %735 = vst [vmem:[%s1688_s25] sm:$0xff] %v727_v3  ;;  %v721_v9 = vmul.f32 %v718_v52, %v690_v4  ;;  %v1020_v10 = vpop.f32.mrb[4].mxu1 }
 0x271   : > { %v730_v11 = vadd.f32 %v722_v7, %v569_v49  ;;  %v705_v12 = vadd.f32 %v1020_v10, %v610_v2  ;;  %v699_v13 = vpop.f32.mrb[5].mxu1 }
 0x272   : > { %v729_v15 = vadd.f32 %v721_v9, %v568_v50  ;;  %v700_v16 = vadd.f32 %v699_v13, %v609_v5 }
 0x273   : > { %738 = vst [vmem:[%s1688_s25 + $0x18] sm:$0xff] %v730_v11  ;;  %v724_v18 = vmul.f32 %v718_v52, %v705_v12 }
 0x274   : > { %737 = vst [vmem:[%s1688_s25 + $0x10] sm:$0xff] %v729_v15  ;;  %v723_v19 = vmul.f32 %v718_v52, %v700_v16  ;;  %v1023_v20 = vpop.f32.mrb[6].mxu1 }
 0x275   : > { %v732_v21 = vadd.f32 %v724_v18, %v571_v58  ;;  %v715_v22 = vadd.f32 %v1023_v20, %v612_v14  ;;  %v709_v23 = vpop.f32.mrb[7].mxu1 }
 0x276   : > { %v731_v24 = vadd.f32 %v723_v19, %v570_v60  ;;  %v710_v25 = vadd.f32 %v709_v23, %v611_v17 }
 0x277   : > { %740 = vst [vmem:[%s1688_s25 + $0x28] sm:$0xff] %v732_v21  ;;  %v726_v26 = vmul.f32 %v718_v52, %v715_v22 }
 0x278   : > { %739 = vst [vmem:[%s1688_s25 + $0x20] sm:$0xff] %v731_v24  ;;  %v725_v27 = vmul.f32 %v718_v52, %v710_v25 }
 0x279   : > { %v734_v28 = vadd.f32 %v726_v26, %v573_v6 }
 0x27a   : > { %v733_v29 = vadd.f32 %v725_v27, %v572_v8 }
 0x27b   : > { %742 = vst [vmem:[%s1688_s25 + $0x38] sm:$0xff] %v734_v28 }
 0x27c   : > { %741 = vst [vmem:[%s1688_s25 + $0x30] sm:$0xff] %v733_v29 }
 0x27d   : > { %1291 = shalt.err (!%p1288_p12)
}
 0x27e   : > { %s1292_s7 = scalar_lea.hbm %s1702_s17, 1024  ;;  %s1296_s20 = scalar_lea.hbm %s1761_s6, 2048 }
 0x27f   : > { %p1293_p8 = scmp.ne.s32.totalorder %s1702_s17, %s1292_s7  ;;  %p1297_p5 = scmp.lt.u32.totalorder %s1702_s17, %s1761_s6 }
 0x280   : > { %p1298_p9 = scmp.lt.u32.totalorder %s1296_s20, %s1292_s7  ;;  %p1300_p4 = scmp.lt.u32.totalorder %s1292_s7, %s1702_s17 }
 0x281   : > { %p1294_p0 = pnand %p1293_p8, %p1807_p6 }
 0x282   : > { %p1299_p2 = por %p1298_p9, %p1297_p5 }
 0x283   : > { %p1295_p7 = pneg %p1294_p0 }
 0x284   : > { %p1301_p10 = por %p1300_p4, %p1299_p2 }
 0x286   : > { %p1302_p3 = pnand %p1301_p10, %p1295_p7 }
 0x288   : > { %1305 = shalt.err (!%p1302_p3)
}
 0x289   : > { %s1383_s8 = smov 128   ;;  %s1384_s29 = smov 8  }
 0x28a   : > { %1068 = dma.vmem_to_hbm [thread:$0]  (%p1807_p6), %s1704_s14, 1024, %s1702_s17, %s744_s26, %s1383_s8, %s1383_s8, %s1384_s29  }
 0x28b PF: > { %s1808_s0 = sld [smem:[#allocation19_spill]]  ;;  %s1809_s30 = sld [smem:[#allocation18_spill]] }
 0x28c   : > { %s772_s9 = sand.u32 1, %s1352_s23  }
 0x28d   : > { %s773_s25 = scalar_lea.sflag [#allocation6], %s772_s9 }
 0x291   : > { %p1810_p13 = scmp.ne.s32.totalorder %s1808_s0, 0  ;;  %p1811_p1 = scmp.ge.s32.totalorder %s1809_s30, 2 }
 0x293   : > { %p1085_p11 = pnand %p1811_p1, %p1810_p13 }
 0x295   : > { %1347 = dma.done.wait (!%p1085_p11), %s773_s25, 1024  }
 0x296   : > { %1349 = vsyncadd (!%p1085_p11), %s773_s25, 4294966272  ;;  %s24_s28 = sadd.s32 1, %s1809_s30   ;;  %s1812_s19 = sld [smem:[#allocation17_spill]] }
 0x297   : > { %p21_p12 = scmp.ge.s32.totalorder %s24_s28, 4   ;;  %s1813_s25 = sld [smem:[#allocation21_spill]] }
 0x298   : > { %s1814_s15 = sld [smem:[#allocation20_spill]]  ;;  %s1815_s23 = smov %s1356_s24 }
 0x299   : > { %s1817_s26 = smov %s1368_s27  ;;  %23 = sbr.rel (!%p21_p12) target bundleno = 11 (0xb), region = 117 }
 0x29c   : > { %s1816_s24 = smov %s1812_s19 }
 0x29e   : > { %s1818_s27 = smov %s1814_s15 }
 0x2a0   :  { %778 = vsyncpa [#allocation5], 1 }
 0x2a1   :  { %780 = vsyncpa [#allocation5 + $0x1], 1 }
 0x2a2   :  { %781 = vsyncpa [#allocation8], 1 }
 0x2a3   :  { %782 = vsyncpa [#allocation6], 1 }
 0x2a4   :  { %784 = vsyncpa [#allocation6 + $0x1], 1 }

</bundles_post_ra>
